<compile_context>
chip_gen: v6e
topology: v6e:2x2x1
jax: 0.10.0
libtpu: 0.0.40
codegen_flags: <defaults>
</compile_context>

<pallas_src>
import jax
import jax.numpy as jnp
from jax import lax
from jax.experimental import pallas as pl
from jax.experimental.pallas import tpu as pltpu


# ---------------------------------------------------------------------------
# Kernels
# ---------------------------------------------------------------------------

def _linear_tiled_kernel(x_ref, w_ref, b_ref, o_ref):
    """One (tm, tn) output tile, accumulated in place across the K grid axis.

    x_ref: (tm, tk)  activation tile (bf16 or f32)
    w_ref: (tn, tk)  PyTorch-layout weight tile
    b_ref: (1, tn)   bias tile (f32)
    o_ref: (tm, tn)  f32 output tile; its BlockSpec index is K-invariant, so the
                     tile stays resident in VMEM across K and doubles as the
                     accumulator (no separate scratch).
    """
    k = pl.program_id(2)

    @pl.when(k == 0)
    def _():
        # Seed the resident output tile with the bias once per (i, j) tile.
        o_ref[...] = jnp.broadcast_to(b_ref[...], o_ref.shape).astype(o_ref.dtype)

    # x @ w.T without materializing a transpose: contract both operands' last dims.
    o_ref[...] += lax.dot_general(
        x_ref[...],
        w_ref[...],
        dimension_numbers=(((1,), (1,)), ((), ())),
        preferred_element_type=jnp.float32,
    )


def _linear_single_tile_kernel(x_ref, w_ref, b_ref, o_ref):
    """Whole problem in one tile: no grid machinery, no branches, no accumulator."""
    o_ref[...] = lax.dot_general(
        x_ref[...],
        w_ref[...],
        dimension_numbers=(((1,), (1,)), ((), ())),
        preferred_element_type=jnp.float32,
    ) + b_ref[...]


# ---------------------------------------------------------------------------
# Wrapper
# ---------------------------------------------------------------------------

def _round_up(v, m):
    return ((v + m - 1) // m) * m


def _maybe_pad2d(a, rows, cols):
    r, c = a.shape
    if r == rows and c == cols:
        return a  # skip the pad (and its HBM round trip) when already aligned
    return jnp.pad(a, ((0, rows - r), (0, cols - c)))


def _pick_tile(dim, cap, quantum):
    """Largest multiple of `quantum` that divides `dim` and is <= cap (dim % quantum == 0)."""
    t = min(cap, dim)
    t -= t % quantum
    while t > quantum and dim % t != 0:
        t -= quantum
    return max(t, quantum)


def mlp_classifier_forward(x, weight, bias, *,
                           tm_cap=512, tn_cap=512, tk_cap=1024,
                           use_bf16=True):
    """Equivalent of MLPClassifier.forward: out = x @ weight.T + bias.

    x:      (batch, input_size)
    weight: (num_classes, input_size)   (PyTorch nn.Linear layout, NOT transposed)
    bias:   (num_classes,)
    returns (batch, num_classes) float32
    """
    batch, input_size = x.shape
    num_classes, k_in = weight.shape
    assert k_in == input_size
    assert bias.shape == (num_classes,)

    # Minimal alignment padding only (8 sublanes / 128 lanes). Tiles are divisors of
    # the padded dims, so no extra tile-multiple padding of x is ever materialized.
    B = _round_up(batch, 8)
    K = _round_up(input_size, 128)
    N = _round_up(num_classes, 128)

    tm = _pick_tile(B, tm_cap, 8)
    tn = _pick_tile(N, tn_cap, 128)
    tk = _pick_tile(K, tk_cap, 128)

    # v7x: both TensorCores only engage if a "parallel" grid axis has >= 2 steps.
    # When one M tile would cover the whole (padded) batch, split it in two.
    if B // tm == 1 and B >= 16:
        tm = _pick_tile(B, max(B // 2, 8), 8)

    in_dtype = jnp.bfloat16 if use_bf16 else jnp.float32
    itemsize = 2 if use_bf16 else 4

    x_p = _maybe_pad2d(x.astype(in_dtype), B, K)
    w_p = _maybe_pad2d(weight.astype(in_dtype), N, K)
    b_p = _maybe_pad2d(bias.astype(jnp.float32).reshape(1, num_classes), 1, N)

    cost = pl.CostEstimate(
        flops=2 * B * N * K,
        transcendentals=0,
        bytes_accessed=itemsize * (B * K + N * K) + 4 * (B * N + N),
    )

    grid = (B // tm, N // tn, K // tk)

    if grid == (1, 1, 1):
        # Overhead-bound single-tile problems (e.g. the module's 8x32 -> 16 forward):
        # whole arrays in VMEM, no grid, no pl.when, no accumulator round trip.
        out = pl.pallas_call(
            _linear_single_tile_kernel,
            out_shape=jax.ShapeDtypeStruct((B, N), jnp.float32),
            cost_estimate=cost,
        )(x_p, w_p, b_p)
        return out[:batch, :num_classes]

    # Pure K-stream (single N tile, several K steps): deepen input buffering so DMA
    # issue latency/jitter is hidden behind compute.
    buf = {"pipeline_mode": pl.Buffered(3)} if (grid[1] == 1 and grid[2] >= 2) else {}
    n_buf = 3 if buf else 2

    # Double/triple-buffered working-set estimate; only raise the scoped VMEM limit if
    # larger-than-default caps push past v5e's 16 MiB scoped default.
    vmem_bytes = (n_buf * (tm * tk + tn * tk) * itemsize   # x + w input buffers
                  + 2 * tm * tn * 4                        # resident/double-buffered f32 output
                  + 2 * tn * 4)                            # bias
    compiler_kwargs = {}
    if vmem_bytes > 12 * 1024 * 1024:
        compiler_kwargs["vmem_limit_bytes"] = int(vmem_bytes * 1.5)

    out = pl.pallas_call(
        _linear_tiled_kernel,
        out_shape=jax.ShapeDtypeStruct((B, N), jnp.float32),
        grid=grid,
        in_specs=[
            pl.BlockSpec((tm, tk), lambda i, j, k: (i, k), **buf),   # x tile
            pl.BlockSpec((tn, tk), lambda i, j, k: (j, k), **buf),   # weight tile (PyTorch layout)
            pl.BlockSpec((1, tn), lambda i, j, k: (0, j)),           # bias tile
        ],
        out_specs=pl.BlockSpec((tm, tn), lambda i, j, k: (i, j)),    # K-invariant -> accumulator
        compiler_params=pltpu.CompilerParams(
            dimension_semantics=("parallel", "parallel", "arbitrary"),
            **compiler_kwargs,
        ),
        cost_estimate=cost,
    )(x_p, w_p, b_p)

    return out[:batch, :num_classes]


# ---------------------------------------------------------------------------
# Self-test
# ---------------------------------------------------------------------------

if __name__ == "__main__":
    # Small shapes consistent with the module's forward: only fc1 exists, so
    # input_size=32, num_classes=16, batch=8 (hidden_size1/2/3 are unused).
    batch, input_size, num_classes = 8, 32, 16

    keys = jax.random.split(jax.random.PRNGKey(0), 6)

    x = jax.random.normal(keys[0], (batch, input_size), dtype=jnp.float32)
    # Deterministic init mimicking nn.Linear's uniform(-1/sqrt(fan_in), 1/sqrt(fan_in)).
    bound = 1.0 / (input_size ** 0.5)
    weight = jax.random.uniform(keys[1], (num_classes, input_size),
                                minval=-bound, maxval=bound, dtype=jnp.float32)
    bias = jax.random.uniform(keys[2], (num_classes,),
                              minval=-bound, maxval=bound, dtype=jnp.float32)

    ref = x @ weight.T + bias

    # 1) Module-sized problem -> single-tile fast path, bf16 operands / f32 accumulate.
    out = jax.block_until_ready(mlp_classifier_forward(x, weight, bias))
    assert out.shape == (batch, num_classes)
    assert jnp.allclose(out, ref, atol=2e-2, rtol=2e-2), "bf16 fast-path mismatch"

    # 2) Exact-parity check on the same shape with f32 operands.
    out_f32 = jax.block_until_ready(mlp_classifier_forward(x, weight, bias, use_bf16=False))
    assert jnp.allclose(out_f32, ref, atol=1e-5, rtol=1e-5), "f32 fast-path mismatch"

    # 3) Larger shape to exercise the tiled grid path (resident-output accumulation,
    #    megacore-parallel M axis, 3-deep input buffering).
    b2, k2, n2 = 1024, 3072, 512
    x2 = jax.random.normal(keys[3], (b2, k2), dtype=jnp.float32)
    w2 = jax.random.normal(keys[4], (n2, k2), dtype=jnp.float32) / (k2 ** 0.5)
    bias2 = jax.random.normal(keys[5], (n2,), dtype=jnp.float32)
    out2 = jax.block_until_ready(mlp_classifier_forward(x2, w2, bias2))
    ref2 = x2 @ w2.T + bias2
    assert out2.shape == (b2, n2)
    assert jnp.allclose(out2, ref2, atol=3e-2, rtol=3e-2), "tiled-path mismatch"

    print("KERNEL_OK")
</pallas_src>

<mosaic_0001>
module attributes {stable_mosaic.version = 11 : i64} {
  func.func @_linear_single_tile_kernel(%arg0: memref<8x128xbf16, #tpu.memory_space<vmem>>, %arg1: memref<128x128xbf16, #tpu.memory_space<vmem>>, %arg2: memref<1x128xf32, #tpu.memory_space<vmem>>, %arg3: memref<8x128xf32, #tpu.memory_space<vmem>>) attributes {dimension_semantics = [], scalar_prefetch = 0 : i64, scratch_operands = 0 : i64, tpu.core_type = #tpu.core_type<tc>} {
    %c0 = arith.constant 0 : index
    %c0_0 = arith.constant 0 : index
    %0 = vector.load %arg0[%c0, %c0_0] : memref<8x128xbf16, #tpu.memory_space<vmem>>, vector<8x128xbf16>
    %c0_1 = arith.constant 0 : index
    %c0_2 = arith.constant 0 : index
    %1 = vector.load %arg1[%c0_1, %c0_2] : memref<128x128xbf16, #tpu.memory_space<vmem>>, vector<128x128xbf16>
    %cst = arith.constant dense<0.000000e+00> : vector<8x128xf32>
    %2 = tpu.matmul %0, %1, %cst {dimension_numbers = #tpu.dot_dimension_numbers<[1], [1], [0], [0], [0, 0, 1, 0], [], []>} : vector<8x128xbf16>, vector<128x128xbf16>, vector<8x128xf32> -> vector<8x128xf32>
    %c0_3 = arith.constant 0 : index
    %c0_4 = arith.constant 0 : index
    %3 = vector.load %arg2[%c0_3, %c0_4] : memref<1x128xf32, #tpu.memory_space<vmem>>, vector<1x128xf32>
    %4 = vector.broadcast %3 : vector<1x128xf32> to vector<8x128xf32>
    %5 = arith.addf %2, %4 : vector<8x128xf32>
    %c0_5 = arith.constant 0 : index
    %c0_6 = arith.constant 0 : index
    %6 = vector.load %arg3[%c0_5, %c0_6] : memref<8x128xf32, #tpu.memory_space<vmem>>, vector<8x128xf32>
    tpu.vector_store %arg3[%c0_5, %c0_6], %5 {strides = array<i32>} : memref<8x128xf32, #tpu.memory_space<vmem>>, vector<8x128xf32>,
    return
  }
}

</mosaic_0001>

<bundles_post_ra>
// kernel: tpu_custom_call.1
= control target key start
LH: loop header
LB: loop body
LE: loop exit
PB: predicated region body
PF: predicated region fallthrough
CT: control target
= control target key end

     0   :  { %8 = vsyncpa [#allocation3], 0  ;;  %s329_s0 = inlined_call_operand.hbm [shape: bf16[8,128], index: 0, kind: input, shape index: {}]   ;;  %s330_s1 = inlined_call_operand.hbm [shape: bf16[128,128], index: 1, kind: input, shape index: {}]   ;;  %s331_s2 = inlined_call_operand.vmem [shape: f32[1,128], index: 2, kind: input, shape index: {}]   ;;  %s332_s3 = inlined_call_operand.hbm [shape: f32[8,128], index: 3, kind: output, shape index: {}]  }
   0x1   :  { %9 = vsyncpa [#allocation6], 0 }
   0x2   :  { %10 = vsyncpa [#allocation4], 0  ;;  %s290_s12 = smov [#allocation2]   ;;  %s291_s14 = smov [#allocation5]  }
   0x3   :  { %s17_s13 = sshll.u32 %s290_s12, 4  ;;  %s26_s15 = sshll.u32 %s291_s14, 4  ;;  %s18_s13 = int_to_ptr.vmem [resolvable:$true] %s17_s13  ;;  %s27_s15 = int_to_ptr.vmem [resolvable:$true] %s26_s15 }
   0x4   :  { %s232_s16 = scalar_lea.vmem %s18_s13, 64  ;;  %p237_p1 = scmp.lt.s32.totalorder %s18_s13, %s18_s13 }
   0x5   :  { %p233_p0 = scmp.ne.s32.totalorder %s18_s13, %s232_s16  ;;  %p238_p2 = scmp.lt.s32.totalorder %s232_s16, %s232_s16 }
   0x7   :  { %p239_p3 = por %p238_p2, %p237_p1 }
   0x9   :  { %p240_p4 = pnand %p239_p3, %p233_p0 }
   0xb   :  { %243 = shalt.err (!%p240_p4)
}
   0xc   :  { %20 = dma.hbm_to_vmem [thread:$0]  %s329_s0, 64, %s18_s13, [#allocation3]  }
   0xd   :  { %s252_s19 = scalar_lea.vmem %s27_s15, 1024  ;;  %p257_p6 = scmp.lt.s32.totalorder %s27_s15, %s27_s15 }
   0xe   :  { %p253_p5 = scmp.ne.s32.totalorder %s27_s15, %s252_s19  ;;  %p258_p7 = scmp.lt.s32.totalorder %s252_s19, %s252_s19 }
  0x10   :  { %p259_p8 = por %p258_p7, %p257_p6 }
  0x12   :  { %p260_p9 = pnand %p259_p8, %p253_p5 }
  0x14   :  { %263 = shalt.err (!%p260_p9)
}
  0x15   :  { %s292_s20 = smov 64   ;;  %s293_s21 = smov 4  }
  0x16   :  { %32 = dma.hbm_to_vmem [thread:$0]  %s330_s1, 1024, %s27_s15, [#allocation6], %s292_s20, %s292_s20, %s293_s21  }
  0x17   :  { %284 = dma.done.wait [#allocation3], 64  }
  0x18   :  { %285 = vsyncadd [#allocation3], 4294967232 }
  0x19   :  { %286 = dma.done.wait [#allocation6], 1024  }
  0x1a   :  { %287 = vsyncadd [#allocation6], 4294966272  ;;  %v294_v0 = vmov 0.0   ;;  %vm295_vm0 = vmmov 0   ;;  %v216_v1 = vld [vmem:[#allocation5 + $0x38] sm:$0xff]   ;;  %v217_v2 = vld [vmem:[#allocation5 + $0x30] sm:$0xff]  }
  0x1b   :  { %189 = vmatprep.subr.bf16.mxu0 %v294_v0  ;;  %205 = vmatprep.mubr.msk.bf16.mxu0 %vm295_vm0, %v294_v0  ;;  %v218_v3 = vld [vmem:[#allocation5 + $0x28] sm:$0xff]   ;;  %v219_v4 = vld [vmem:[#allocation5 + $0x20] sm:$0xff]   ;;  %v220_v5 = vld [vmem:[#allocation5 + $0x18] sm:$0xff]   ;;  %s296_s24 = smov [#allocation7]  }
  0x1c   :  { %190 = vmatpush3.bf16.xpose.msra.mxu0 %v216_v1  ;;  %v221_v6 = vld [vmem:[#allocation5 + $0x10] sm:$0xff]   ;;  %v222_v7 = vld [vmem:[#allocation5 + $0x8] sm:$0xff]   ;;  %v223_v8 = vld [vmem:[#allocation5] sm:$0xff]   ;;  %s161_s25 = sshll.u32 %s296_s24, 4  ;;  %s162_s25 = int_to_ptr.vmem [resolvable:$true] %s161_s25 }
  0x1d   :  { %191 = vmatprep.subr.bf16.mxu0 %v294_v0  ;;  %v42_v9 = vld [vmem:[#allocation2] sm:$0xf]  ;;  %s264_s26 = scalar_lea.vmem %s162_s25, 128  ;;  %p269_p11 = scmp.lt.s32.totalorder %s162_s25, %s162_s25 }
  0x1e   :  { %v171_v10 = vld [vmem:[%s331_s2] ss:$0 sm:$0xff]  ;;  %p265_p10 = scmp.ne.s32.totalorder %s162_s25, %s264_s26  ;;  %p270_p12 = scmp.lt.s32.totalorder %s264_s26, %s264_s26 }
  0x20   :  { %p271_p13 = por %p270_p12, %p269_p11 }
  0x22   :  { %p272_p0 = pnand %p271_p13, %p265_p10 }
  0x24   :  { %192 = vmatpush3.bf16.xpose.msra.mxu0 %v217_v2 }
  0x25   :  { %193 = vmatprep.subr.bf16.mxu0 %v294_v0 }
  0x2c   :  { %194 = vmatpush3.bf16.xpose.msra.mxu0 %v218_v3 }
  0x2d   :  { %195 = vmatprep.subr.bf16.mxu0 %v294_v0 }
  0x34   :  { %196 = vmatpush3.bf16.xpose.msra.mxu0 %v219_v4 }
  0x35   :  { %197 = vmatprep.subr.bf16.mxu0 %v294_v0 }
  0x3c   :  { %198 = vmatpush3.bf16.xpose.msra.mxu0 %v220_v5 }
  0x3d   :  { %199 = vmatprep.subr.bf16.mxu0 %v294_v0 }
  0x44   :  { %200 = vmatpush3.bf16.xpose.msra.mxu0 %v221_v6 }
  0x45   :  { %201 = vmatprep.subr.bf16.mxu0 %v294_v0 }
  0x4c   :  { %202 = vmatpush3.bf16.xpose.msra.mxu0 %v222_v7 }
  0x4d   :  { %203 = vmatprep.subr.bf16.mxu0 %v294_v0 }
  0x54   :  { %204 = vmatpush3.bf16.xpose.msra.mxu0 %v223_v8 }
  0x5b   :  { %206 = vmatmul.mubr.bf16.vlgmr.msra.gmra.mxu0 %v42_v9 }
 0x11b   :  { %v148_v11 = vpop.f32.mrf.mxu0 }
 0x11c   :  { %v149_v12 = vadd.f32 %v171_v10, %v148_v11 }
 0x11d   :  { %v207_v13 = vpop.f32.mrf.mxu0 }
 0x11e   :  { %154 = vst [vmem:[#allocation7] sm:$0xff] %v149_v12 }
 0x11f   :  { %v151_v14 = vpop.f32.mrf.mxu0 }
 0x120   :  { %275 = shalt.err (!%p272_p0)
}
 0x121   :  { %164 = dma.vmem_to_hbm [thread:$0]  %s162_s25, 128, %s332_s3, [#allocation4]   ;;  %v208_v15 = vpop.f32.mrf.mxu0 }
 0x122   :  { %288 = dma.done.wait [#allocation4], 128  }
 0x123   :  { %289 = vsyncadd [#allocation4], 4294967168 }
 0x124   :  { %168 = vsyncpa [#allocation3], 1 }
 0x125   :  { %169 = vsyncpa [#allocation6], 1 }
 0x126   :  { %170 = vsyncpa [#allocation4], 1 }

</bundles_post_ra>
